<compile_context>
chip_gen: v6e
topology: v6e:2x2x1
jax: 0.10.0
libtpu: 0.0.40
codegen_flags: <defaults>
</compile_context>

<pallas_src>
import jax
import jax.numpy as jnp
from jax.experimental import pallas as pl
from jax.experimental.pallas import tpu as pltpu


def _round_up(x, m):
    return ((x + m - 1) // m) * m


# ----------------------------------------------------------------------------
# Pallas kernels
# ----------------------------------------------------------------------------
def _conv_relu_pool_kernel(p_ref, w_ref, b_ref, o_ref):
    """Fused conv (as matmul) + 2x2 max-pool + bias + ReLU on one lane tile.

    p_ref: (4, Kpad, TN) bf16  im2col patches, leading axis = pool-window pos
    w_ref: (Cout, Kpad) bf16   flattened conv weight (c, kh, kw ordering)
    b_ref: (Cout, 1) f32       bias
    o_ref: (Cout, TN) bf16     pooled output tile (lane-dense, TN % 128 == 0)
    """
    w = w_ref[...]

    def tap(i):  # raw f32 accumulator; bias/ReLU hoisted after the max
        return jnp.dot(w, p_ref[i], preferred_element_type=jnp.float32)

    m = jnp.maximum(jnp.maximum(tap(0), tap(1)), jnp.maximum(tap(2), tap(3)))
    o_ref[...] = jnp.maximum(m + b_ref[...], 0.0).astype(o_ref.dtype)


def _fc_stack_kernel(x_ref, w1_ref, b1_ref, w2_ref, b2_ref, w3_ref, b3_ref,
                     o_ref):
    """Fused fc1+ReLU, fc2+ReLU, fc3 on one batch tile.

    x:(TB,400) bf16; w1:(400,128), w2:(128,128), w3:(128,128) bf16 (zero-
    padded hidden/logit dims); biases (1,128) f32; o:(TB,128) f32.
    """
    h = jnp.dot(x_ref[...], w1_ref[...], preferred_element_type=jnp.float32)
    h = jnp.maximum(h + b1_ref[...], 0.0)
    h = jnp.dot(h.astype(w2_ref.dtype), w2_ref[...],
                preferred_element_type=jnp.float32)
    h = jnp.maximum(h + b2_ref[...], 0.0)
    o = jnp.dot(h.astype(w3_ref.dtype), w3_ref[...],
                preferred_element_type=jnp.float32)
    o_ref[...] = (o + b3_ref[...]).astype(o_ref.dtype)


# ----------------------------------------------------------------------------
# Plain-JAX glue: im2col grouped by 2x2 pooling-window position.
# TODO(synk): patch extraction stays XLA-side glue; fully in-kernel extraction
#             would need strided lane/sublane slicing of the VMEM input.
# ----------------------------------------------------------------------------
def _pooled_patches(x_cbhw, k, dtype=jnp.bfloat16):
    """x: (C, B, H, W) -> (patches (4, Kpad, N), (B, Hp, Wp)).

    patches[wi*2+wj, c*k*k + kh*k + kw, b*Hp*Wp + io*Wp + jo]
        = x[c, b, 2*io + wi + kh, 2*jo + wj + kw]
    K is zero-padded to a multiple of 16 (bf16 sublane packing).
    """
    C, B, H, W = x_cbhw.shape
    Ho, Wo = H - k + 1, W - k + 1
    assert Ho % 2 == 0 and Wo % 2 == 0, "LeNet conv outputs must pool evenly"
    Hp, Wp = Ho // 2, Wo // 2
    K = C * k * k
    Kpad = _round_up(K, 16)

    wins = []
    for wi in range(2):
        for wj in range(2):
            taps = []
            for kh in range(k):
                for kw in range(k):
                    taps.append(
                        x_cbhw[:, :,
                               wi + kh: wi + kh + 2 * Hp: 2,
                               wj + kw: wj + kw + 2 * Wp: 2])  # (C,B,Hp,Wp)
            t = jnp.stack(taps, axis=1)                # (C, k*k, B, Hp, Wp)
            wins.append(t.reshape(K, B * Hp * Wp))
    p = jnp.stack(wins, axis=0).astype(dtype)          # (4, K, N)
    if Kpad != K:
        p = jnp.pad(p, ((0, 0), (0, Kpad - K), (0, 0)))
    return p, (B, Hp, Wp)


def _conv_w_col(w_oihw, kpad, dtype=jnp.bfloat16):
    cout = w_oihw.shape[0]
    w = w_oihw.reshape(cout, -1).astype(dtype)         # (Cout, C*k*k)
    kk = w.shape[1]
    if kpad != kk:
        w = jnp.pad(w, ((0, 0), (0, kpad - kk)))
    return w


# ----------------------------------------------------------------------------
# Stage wrappers
# ----------------------------------------------------------------------------
def conv_relu_pool(x_cbhw, w_oihw, b, k, max_tn=512):
    """Conv2d(valid, stride 1) + ReLU + max_pool2d(2).  Output (Cout,B,Hp,Wp)."""
    cout = w_oihw.shape[0]
    patches, (B, Hp, Wp) = _pooled_patches(x_cbhw, k)
    kpad, n = patches.shape[1], patches.shape[2]

    # Lane-axis tiling: 128-aligned tile, grid over N = B*Hp*Wp.
    tn = min(max_tn, _round_up(n, 128))
    npad = _round_up(n, tn)
    if npad != n:
        patches = jnp.pad(patches, ((0, 0), (0, 0), (0, npad - n)))
    grid = (npad // tn,)

    w_col = _conv_w_col(w_oihw, kpad)
    bias = b.reshape(cout, 1).astype(jnp.float32)

    cost = pl.CostEstimate(
        flops=2 * 4 * cout * kpad * npad,
        transcendentals=0,
        bytes_accessed=(patches.size * 2 + w_col.size * 2 + bias.size * 4
                        + cout * npad * 2),
    )

    out = pl.pallas_call(
        _conv_relu_pool_kernel,
        out_shape=jax.ShapeDtypeStruct((cout, npad), jnp.bfloat16),
        grid=grid,
        in_specs=[
            pl.BlockSpec((4, kpad, tn), lambda i: (0, 0, i)),
            pl.BlockSpec((cout, kpad), lambda i: (0, 0)),
            pl.BlockSpec((cout, 1), lambda i: (0, 0)),
        ],
        out_specs=pl.BlockSpec((cout, tn), lambda i: (0, i)),
        compiler_params=pltpu.CompilerParams(
            dimension_semantics=("parallel",)),
        cost_estimate=cost,
    )(patches, w_col, bias)

    if npad != n:
        out = out[:, :n]
    return out.reshape(cout, B, Hp, Wp)


def fc_stack(x, wf1, bf1, wf2, bf2, wf3, bf3):
    B, feat = x.shape                       # (B, 400)
    num_classes = wf3.shape[0]
    H1 = _round_up(wf1.shape[0], 128)       # 120 -> 128
    H2 = _round_up(wf2.shape[0], 128)       # 84  -> 128
    H3 = _round_up(num_classes, 128)        # 10  -> 128

    def pad2(a, r, c):
        return jnp.pad(a, ((0, r - a.shape[0]), (0, c - a.shape[1])))

    # Zero-padded hidden/logit dims are ReLU- and matmul-invariant.
    w1p = pad2(wf1.T.astype(jnp.bfloat16), feat, H1)
    w2p = pad2(wf2.T.astype(jnp.bfloat16), H1, H2)
    w3p = pad2(wf3.T.astype(jnp.bfloat16), H2, H3)
    b1p = pad2(bf1.reshape(1, -1).astype(jnp.float32), 1, H1)
    b2p = pad2(bf2.reshape(1, -1).astype(jnp.float32), 1, H2)
    b3p = pad2(bf3.reshape(1, -1).astype(jnp.float32), 1, H3)

    # Batch tiling: native-MXU-sized blocks for big batch, one block otherwise.
    tb = 256 if B >= 256 else _round_up(B, 8)
    bpad = _round_up(B, tb)
    xb = x.astype(jnp.bfloat16)
    if bpad != B:
        xb = jnp.pad(xb, ((0, bpad - B), (0, 0)))
    grid = (bpad // tb,)

    cost = pl.CostEstimate(
        flops=2 * bpad * (feat * H1 + H1 * H2 + H2 * H3),
        transcendentals=0,
        bytes_accessed=(xb.size * 2
                        + (w1p.size + w2p.size + w3p.size) * 2
                        + (b1p.size + b2p.size + b3p.size) * 4
                        + bpad * H3 * 4),
    )

    out = pl.pallas_call(
        _fc_stack_kernel,
        out_shape=jax.ShapeDtypeStruct((bpad, H3), jnp.float32),
        grid=grid,
        in_specs=[
            pl.BlockSpec((tb, feat), lambda i: (i, 0)),
            pl.BlockSpec((feat, H1), lambda i: (0, 0)),
            pl.BlockSpec((1, H1), lambda i: (0, 0)),
            pl.BlockSpec((H1, H2), lambda i: (0, 0)),
            pl.BlockSpec((1, H2), lambda i: (0, 0)),
            pl.BlockSpec((H2, H3), lambda i: (0, 0)),
            pl.BlockSpec((1, H3), lambda i: (0, 0)),
        ],
        out_specs=pl.BlockSpec((tb, H3), lambda i: (i, 0)),
        compiler_params=pltpu.CompilerParams(
            dimension_semantics=("parallel",)),
        cost_estimate=cost,
    )(xb, w1p, b1p, w2p, b2p, w3p, b3p)

    return out[:B, :num_classes]


# ----------------------------------------------------------------------------
# LeNet forward
# ----------------------------------------------------------------------------
def lenet_forward(x_nchw, params):
    # NCHW -> CBHW (channel-first, batch second): conv-stage outputs chain
    # into the next stage's patch extraction with a plain reshape.
    # TODO(synk): with in-kernel tap extraction, conv1->conv2 could be chained
    #             through VMEM scratch inside one pallas_call for small batch.
    x = jnp.transpose(x_nchw, (1, 0, 2, 3))
    o1 = conv_relu_pool(x, params["w1"], params["b1"], 5)    # (6,  B, 14, 14)
    o2 = conv_relu_pool(o1, params["w2"], params["b2"], 5)   # (16, B,  5,  5)
    cout, B, hp, wp = o2.shape
    # PyTorch's flatten is per-sample (C, H, W)-major.
    feat = jnp.transpose(o2, (1, 0, 2, 3)).reshape(B, cout * hp * wp)
    return fc_stack(feat,
                    params["wf1"], params["bf1"],
                    params["wf2"], params["bf2"],
                    params["wf3"], params["bf3"])


def init_params(key, num_classes=10):
    ks = jax.random.split(key, 10)
    s = 0.1
    return {
        "w1": s * jax.random.normal(ks[0], (6, 3, 5, 5), jnp.float32),
        "b1": s * jax.random.normal(ks[1], (6,), jnp.float32),
        "w2": s * jax.random.normal(ks[2], (16, 6, 5, 5), jnp.float32),
        "b2": s * jax.random.normal(ks[3], (16,), jnp.float32),
        "wf1": s * jax.random.normal(ks[4], (120, 16 * 5 * 5), jnp.float32),
        "bf1": s * jax.random.normal(ks[5], (120,), jnp.float32),
        "wf2": s * jax.random.normal(ks[6], (84, 120), jnp.float32),
        "bf2": s * jax.random.normal(ks[7], (84,), jnp.float32),
        "wf3": s * jax.random.normal(ks[8], (num_classes, 84), jnp.float32),
        "bf3": s * jax.random.normal(ks[9], (num_classes,), jnp.float32),
    }


if __name__ == "__main__":
    key = jax.random.PRNGKey(0)
    k_in, k_params = jax.random.split(key)
    # LeNet needs 32x32 spatial input so that flatten yields 16*5*5 = 400.
    B = 2
    x = jax.random.normal(k_in, (B, 3, 32, 32), jnp.float32)
    params = init_params(k_params)

    out = jax.jit(lenet_forward)(x, params)
    out = jax.block_until_ready(out)

    assert out.shape == (B, 10), out.shape
    assert bool(jnp.all(jnp.isfinite(out)))
    print("KERNEL_OK")
</pallas_src>

<mosaic_0001>
module attributes {stable_mosaic.version = 11 : i64} {
  func.func @_conv_relu_pool_kernel(%arg0: i32, %arg1: memref<4x80x512xbf16, #tpu.memory_space<vmem>>, %arg2: memref<6x80xbf16, #tpu.memory_space<vmem>>, %arg3: memref<6x1xf32, #tpu.memory_space<vmem>>, %arg4: memref<6x512xbf16, #tpu.memory_space<vmem>>) attributes {dimension_semantics = [#tpu.dimension_semantics<parallel>], iteration_bounds = array<i64: 1>, scalar_prefetch = 0 : i64, scratch_operands = 0 : i64, tpu.core_type = #tpu.core_type<tc>, window_params = [{transform_indices = @transform_0, window_bounds = array<i64: 4, 80, 512>}, {pipeline_mode = #tpu.pipeline_mode<synchronous>, transform_indices = @transform_1, window_bounds = array<i64: 6, 80>}, {pipeline_mode = #tpu.pipeline_mode<synchronous>, transform_indices = @transform_2, window_bounds = array<i64: 6, 1>}, {transform_indices = @transform_3, window_bounds = array<i64: 6, 512>}]} {
    %c0 = arith.constant 0 : index
    %c0_0 = arith.constant 0 : index
    %0 = vector.load %arg2[%c0, %c0_0] : memref<6x80xbf16, #tpu.memory_space<vmem>>, vector<6x80xbf16>
    %c0_1 = arith.constant 0 : index
    %c0_2 = arith.constant 0 : index
    %c0_3 = arith.constant 0 : index
    %1 = vector.load %arg1[%c0_1, %c0_2, %c0_3] : memref<4x80x512xbf16, #tpu.memory_space<vmem>>, vector<1x80x512xbf16>
    %2 = vector.shape_cast %1 : vector<1x80x512xbf16> to vector<80x512xbf16>
    %cst = arith.constant dense<0.000000e+00> : vector<6x512xf32>
    %3 = tpu.matmul %0, %2, %cst {dimension_numbers = #tpu.dot_dimension_numbers<[1], [0], [0], [1], [0, 0, 1, 1], [], []>} : vector<6x80xbf16>, vector<80x512xbf16>, vector<6x512xf32> -> vector<6x512xf32>
    %c1 = arith.constant 1 : index
    %c0_4 = arith.constant 0 : index
    %c0_5 = arith.constant 0 : index
    %4 = vector.load %arg1[%c1, %c0_4, %c0_5] : memref<4x80x512xbf16, #tpu.memory_space<vmem>>, vector<1x80x512xbf16>
    %5 = vector.shape_cast %4 : vector<1x80x512xbf16> to vector<80x512xbf16>
    %cst_6 = arith.constant dense<0.000000e+00> : vector<6x512xf32>
    %6 = tpu.matmul %0, %5, %cst_6 {dimension_numbers = #tpu.dot_dimension_numbers<[1], [0], [0], [1], [0, 0, 1, 1], [], []>} : vector<6x80xbf16>, vector<80x512xbf16>, vector<6x512xf32> -> vector<6x512xf32>
    %7 = arith.maximumf %3, %6 : vector<6x512xf32>
    %c2 = arith.constant 2 : index
    %c0_7 = arith.constant 0 : index
    %c0_8 = arith.constant 0 : index
    %8 = vector.load %arg1[%c2, %c0_7, %c0_8] : memref<4x80x512xbf16, #tpu.memory_space<vmem>>, vector<1x80x512xbf16>
    %9 = vector.shape_cast %8 : vector<1x80x512xbf16> to vector<80x512xbf16>
    %cst_9 = arith.constant dense<0.000000e+00> : vector<6x512xf32>
    %10 = tpu.matmul %0, %9, %cst_9 {dimension_numbers = #tpu.dot_dimension_numbers<[1], [0], [0], [1], [0, 0, 1, 1], [], []>} : vector<6x80xbf16>, vector<80x512xbf16>, vector<6x512xf32> -> vector<6x512xf32>
    %c3 = arith.constant 3 : index
    %c0_10 = arith.constant 0 : index
    %c0_11 = arith.constant 0 : index
    %11 = vector.load %arg1[%c3, %c0_10, %c0_11] : memref<4x80x512xbf16, #tpu.memory_space<vmem>>, vector<1x80x512xbf16>
    %12 = vector.shape_cast %11 : vector<1x80x512xbf16> to vector<80x512xbf16>
    %cst_12 = arith.constant dense<0.000000e+00> : vector<6x512xf32>
    %13 = tpu.matmul %0, %12, %cst_12 {dimension_numbers = #tpu.dot_dimension_numbers<[1], [0], [0], [1], [0, 0, 1, 1], [], []>} : vector<6x80xbf16>, vector<80x512xbf16>, vector<6x512xf32> -> vector<6x512xf32>
    %14 = arith.maximumf %10, %13 : vector<6x512xf32>
    %15 = arith.maximumf %7, %14 : vector<6x512xf32>
    %c0_13 = arith.constant 0 : index
    %c0_14 = arith.constant 0 : index
    %16 = vector.load %arg3[%c0_13, %c0_14] : memref<6x1xf32, #tpu.memory_space<vmem>>, vector<6x1xf32>
    %17 = vector.broadcast %16 : vector<6x1xf32> to vector<6x512xf32>
    %18 = arith.addf %15, %17 : vector<6x512xf32>
    %cst_15 = arith.constant 0.000000e+00 : f32
    %19 = vector.broadcast %cst_15 : f32 to vector<6x512xf32>
    %20 = arith.maximumf %18, %19 : vector<6x512xf32>
    %21 = arith.truncf %20 : vector<6x512xf32> to vector<6x512xbf16>
    %c0_16 = arith.constant 0 : index
    %c0_17 = arith.constant 0 : index
    %22 = vector.load %arg4[%c0_16, %c0_17] : memref<6x512xbf16, #tpu.memory_space<vmem>>, vector<6x512xbf16>
    tpu.vector_store %arg4[%c0_16, %c0_17], %21 {strides = array<i32>} : memref<6x512xbf16, #tpu.memory_space<vmem>>, vector<6x512xbf16>,
    return
  }
  func.func @transform_0(%arg0: i32) -> (i32, i32, i32) {
    %c0_i32 = arith.constant 0 : i32
    %c0_i32_0 = arith.constant 0 : i32
    %c0_i32_1 = arith.constant 0 : i32
    return %c0_i32, %c0_i32_0, %arg0 : i32, i32, i32
  }
  func.func @transform_1(%arg0: i32) -> (i32, i32) {
    %c0_i32 = arith.constant 0 : i32
    %c0_i32_0 = arith.constant 0 : i32
    %c0_i32_1 = arith.constant 0 : i32
    return %c0_i32, %c0_i32_0 : i32, i32
  }
  func.func @transform_2(%arg0: i32) -> (i32, i32) {
    %c0_i32 = arith.constant 0 : i32
    %c0_i32_0 = arith.constant 0 : i32
    %c0_i32_1 = arith.constant 0 : i32
    return %c0_i32, %c0_i32_0 : i32, i32
  }
  func.func @transform_3(%arg0: i32) -> (i32, i32) {
    %c0_i32 = arith.constant 0 : i32
    %c0_i32_0 = arith.constant 0 : i32
    return %c0_i32, %arg0 : i32, i32
  }
}

module attributes {stable_mosaic.version = 11 : i64} {
  func.func @_conv_relu_pool_kernel(%arg0: i32, %arg1: memref<4x160x128xbf16, #tpu.memory_space<vmem>>, %arg2: memref<16x160xbf16, #tpu.memory_space<vmem>>, %arg3: memref<16x1xf32, #tpu.memory_space<vmem>>, %arg4: memref<16x128xbf16, #tpu.memory_space<vmem>>) attributes {dimension_semantics = [#tpu.dimension_semantics<parallel>], iteration_bounds = array<i64: 1>, scalar_prefetch = 0 : i64, scratch_operands = 0 : i64, tpu.core_type = #tpu.core_type<tc>, window_params = [{transform_indices = @transform_0, window_bounds = array<i64: 4, 160, 128>}, {pipeline_mode = #tpu.pipeline_mode<synchronous>, transform_indices = @transform_1, window_bounds = array<i64: 16, 160>}, {pipeline_mode = #tpu.pipeline_mode<synchronous>, transform_indices = @transform_2, window_bounds = array<i64: 16, 1>}, {transform_indices = @transform_3, window_bounds = array<i64: 16, 128>}]} {
    %c0 = arith.constant 0 : index
    %c0_0 = arith.constant 0 : index
    %0 = vector.load %arg2[%c0, %c0_0] : memref<16x160xbf16, #tpu.memory_space<vmem>>, vector<16x160xbf16>
    %c0_1 = arith.constant 0 : index
    %c0_2 = arith.constant 0 : index
    %c0_3 = arith.constant 0 : index
    %1 = vector.load %arg1[%c0_1, %c0_2, %c0_3] : memref<4x160x128xbf16, #tpu.memory_space<vmem>>, vector<1x160x128xbf16>
    %2 = vector.shape_cast %1 : vector<1x160x128xbf16> to vector<160x128xbf16>
    %cst = arith.constant dense<0.000000e+00> : vector<16x128xf32>
    %3 = tpu.matmul %0, %2, %cst {dimension_numbers = #tpu.dot_dimension_numbers<[1], [0], [0], [1], [0, 0, 1, 1], [], []>} : vector<16x160xbf16>, vector<160x128xbf16>, vector<16x128xf32> -> vector<16x128xf32>
    %c1 = arith.constant 1 : index
    %c0_4 = arith.constant 0 : index
    %c0_5 = arith.constant 0 : index
    %4 = vector.load %arg1[%c1, %c0_4, %c0_5] : memref<4x160x128xbf16, #tpu.memory_space<vmem>>, vector<1x160x128xbf16>
    %5 = vector.shape_cast %4 : vector<1x160x128xbf16> to vector<160x128xbf16>
    %cst_6 = arith.constant dense<0.000000e+00> : vector<16x128xf32>
    %6 = tpu.matmul %0, %5, %cst_6 {dimension_numbers = #tpu.dot_dimension_numbers<[1], [0], [0], [1], [0, 0, 1, 1], [], []>} : vector<16x160xbf16>, vector<160x128xbf16>, vector<16x128xf32> -> vector<16x128xf32>
    %7 = arith.maximumf %3, %6 : vector<16x128xf32>
    %c2 = arith.constant 2 : index
    %c0_7 = arith.constant 0 : index
    %c0_8 = arith.constant 0 : index
    %8 = vector.load %arg1[%c2, %c0_7, %c0_8] : memref<4x160x128xbf16, #tpu.memory_space<vmem>>, vector<1x160x128xbf16>
    %9 = vector.shape_cast %8 : vector<1x160x128xbf16> to vector<160x128xbf16>
    %cst_9 = arith.constant dense<0.000000e+00> : vector<16x128xf32>
    %10 = tpu.matmul %0, %9, %cst_9 {dimension_numbers = #tpu.dot_dimension_numbers<[1], [0], [0], [1], [0, 0, 1, 1], [], []>} : vector<16x160xbf16>, vector<160x128xbf16>, vector<16x128xf32> -> vector<16x128xf32>
    %c3 = arith.constant 3 : index
    %c0_10 = arith.constant 0 : index
    %c0_11 = arith.constant 0 : index
    %11 = vector.load %arg1[%c3, %c0_10, %c0_11] : memref<4x160x128xbf16, #tpu.memory_space<vmem>>, vector<1x160x128xbf16>
    %12 = vector.shape_cast %11 : vector<1x160x128xbf16> to vector<160x128xbf16>
    %cst_12 = arith.constant dense<0.000000e+00> : vector<16x128xf32>
    %13 = tpu.matmul %0, %12, %cst_12 {dimension_numbers = #tpu.dot_dimension_numbers<[1], [0], [0], [1], [0, 0, 1, 1], [], []>} : vector<16x160xbf16>, vector<160x128xbf16>, vector<16x128xf32> -> vector<16x128xf32>
    %14 = arith.maximumf %10, %13 : vector<16x128xf32>
    %15 = arith.maximumf %7, %14 : vector<16x128xf32>
    %c0_13 = arith.constant 0 : index
    %c0_14 = arith.constant 0 : index
    %16 = vector.load %arg3[%c0_13, %c0_14] : memref<16x1xf32, #tpu.memory_space<vmem>>, vector<16x1xf32>
    %17 = vector.broadcast %16 : vector<16x1xf32> to vector<16x128xf32>
    %18 = arith.addf %15, %17 : vector<16x128xf32>
    %cst_15 = arith.constant 0.000000e+00 : f32
    %19 = vector.broadcast %cst_15 : f32 to vector<16x128xf32>
    %20 = arith.maximumf %18, %19 : vector<16x128xf32>
    %21 = arith.truncf %20 : vector<16x128xf32> to vector<16x128xbf16>
    %c0_16 = arith.constant 0 : index
    %c0_17 = arith.constant 0 : index
    %22 = vector.load %arg4[%c0_16, %c0_17] : memref<16x128xbf16, #tpu.memory_space<vmem>>, vector<16x128xbf16>
    tpu.vector_store %arg4[%c0_16, %c0_17], %21 {strides = array<i32>} : memref<16x128xbf16, #tpu.memory_space<vmem>>, vector<16x128xbf16>,
    return
  }
  func.func @transform_0(%arg0: i32) -> (i32, i32, i32) {
    %c0_i32 = arith.constant 0 : i32
    %c0_i32_0 = arith.constant 0 : i32
    %c0_i32_1 = arith.constant 0 : i32
    return %c0_i32, %c0_i32_0, %arg0 : i32, i32, i32
  }
  func.func @transform_1(%arg0: i32) -> (i32, i32) {
    %c0_i32 = arith.constant 0 : i32
    %c0_i32_0 = arith.constant 0 : i32
    %c0_i32_1 = arith.constant 0 : i32
    return %c0_i32, %c0_i32_0 : i32, i32
  }
  func.func @transform_2(%arg0: i32) -> (i32, i32) {
    %c0_i32 = arith.constant 0 : i32
    %c0_i32_0 = arith.constant 0 : i32
    %c0_i32_1 = arith.constant 0 : i32
    return %c0_i32, %c0_i32_0 : i32, i32
  }
  func.func @transform_3(%arg0: i32) -> (i32, i32) {
    %c0_i32 = arith.constant 0 : i32
    %c0_i32_0 = arith.constant 0 : i32
    return %c0_i32, %arg0 : i32, i32
  }
}

module attributes {stable_mosaic.version = 11 : i64} {
  func.func @_fc_stack_kernel(%arg0: i32, %arg1: memref<8x400xbf16, #tpu.memory_space<vmem>>, %arg2: memref<400x128xbf16, #tpu.memory_space<vmem>>, %arg3: memref<1x128xf32, #tpu.memory_space<vmem>>, %arg4: memref<128x128xbf16, #tpu.memory_space<vmem>>, %arg5: memref<1x128xf32, #tpu.memory_space<vmem>>, %arg6: memref<128x128xbf16, #tpu.memory_space<vmem>>, %arg7: memref<1x128xf32, #tpu.memory_space<vmem>>, %arg8: memref<8x128xf32, #tpu.memory_space<vmem>>) attributes {dimension_semantics = [#tpu.dimension_semantics<parallel>], iteration_bounds = array<i64: 1>, scalar_prefetch = 0 : i64, scratch_operands = 0 : i64, tpu.core_type = #tpu.core_type<tc>, window_params = [{transform_indices = @transform_0, window_bounds = array<i64: 8, 400>}, {pipeline_mode = #tpu.pipeline_mode<synchronous>, transform_indices = @transform_1, window_bounds = array<i64: 400, 128>}, {pipeline_mode = #tpu.pipeline_mode<synchronous>, transform_indices = @transform_2, window_bounds = array<i64: 1, 128>}, {pipeline_mode = #tpu.pipeline_mode<synchronous>, transform_indices = @transform_3, window_bounds = array<i64: 128, 128>}, {pipeline_mode = #tpu.pipeline_mode<synchronous>, transform_indices = @transform_4, window_bounds = array<i64: 1, 128>}, {pipeline_mode = #tpu.pipeline_mode<synchronous>, transform_indices = @transform_5, window_bounds = array<i64: 128, 128>}, {pipeline_mode = #tpu.pipeline_mode<synchronous>, transform_indices = @transform_6, window_bounds = array<i64: 1, 128>}, {transform_indices = @transform_7, window_bounds = array<i64: 8, 128>}]} {
    %c0 = arith.constant 0 : index
    %c0_0 = arith.constant 0 : index
    %0 = vector.load %arg1[%c0, %c0_0] : memref<8x400xbf16, #tpu.memory_space<vmem>>, vector<8x400xbf16>
    %c0_1 = arith.constant 0 : index
    %c0_2 = arith.constant 0 : index
    %1 = vector.load %arg2[%c0_1, %c0_2] : memref<400x128xbf16, #tpu.memory_space<vmem>>, vector<400x128xbf16>
    %cst = arith.constant dense<0.000000e+00> : vector<8x128xf32>
    %2 = tpu.matmul %0, %1, %cst {dimension_numbers = #tpu.dot_dimension_numbers<[1], [0], [0], [1], [0, 0, 1, 1], [], []>} : vector<8x400xbf16>, vector<400x128xbf16>, vector<8x128xf32> -> vector<8x128xf32>
    %c0_3 = arith.constant 0 : index
    %c0_4 = arith.constant 0 : index
    %3 = vector.load %arg3[%c0_3, %c0_4] : memref<1x128xf32, #tpu.memory_space<vmem>>, vector<1x128xf32>
    %4 = vector.broadcast %3 : vector<1x128xf32> to vector<8x128xf32>
    %5 = arith.addf %2, %4 : vector<8x128xf32>
    %cst_5 = arith.constant 0.000000e+00 : f32
    %6 = vector.broadcast %cst_5 : f32 to vector<8x128xf32>
    %7 = arith.maximumf %5, %6 : vector<8x128xf32>
    %8 = arith.truncf %7 : vector<8x128xf32> to vector<8x128xbf16>
    %c0_6 = arith.constant 0 : index
    %c0_7 = arith.constant 0 : index
    %9 = vector.load %arg4[%c0_6, %c0_7] : memref<128x128xbf16, #tpu.memory_space<vmem>>, vector<128x128xbf16>
    %cst_8 = arith.constant dense<0.000000e+00> : vector<8x128xf32>
    %10 = tpu.matmul %8, %9, %cst_8 {dimension_numbers = #tpu.dot_dimension_numbers<[1], [0], [0], [1], [0, 0, 1, 1], [], []>} : vector<8x128xbf16>, vector<128x128xbf16>, vector<8x128xf32> -> vector<8x128xf32>
    %c0_9 = arith.constant 0 : index
    %c0_10 = arith.constant 0 : index
    %11 = vector.load %arg5[%c0_9, %c0_10] : memref<1x128xf32, #tpu.memory_space<vmem>>, vector<1x128xf32>
    %12 = vector.broadcast %11 : vector<1x128xf32> to vector<8x128xf32>
    %13 = arith.addf %10, %12 : vector<8x128xf32>
    %cst_11 = arith.constant 0.000000e+00 : f32
    %14 = vector.broadcast %cst_11 : f32 to vector<8x128xf32>
    %15 = arith.maximumf %13, %14 : vector<8x128xf32>
    %16 = arith.truncf %15 : vector<8x128xf32> to vector<8x128xbf16>
    %c0_12 = arith.constant 0 : index
    %c0_13 = arith.constant 0 : index
    %17 = vector.load %arg6[%c0_12, %c0_13] : memref<128x128xbf16, #tpu.memory_space<vmem>>, vector<128x128xbf16>
    %cst_14 = arith.constant dense<0.000000e+00> : vector<8x128xf32>
    %18 = tpu.matmul %16, %17, %cst_14 {dimension_numbers = #tpu.dot_dimension_numbers<[1], [0], [0], [1], [0, 0, 1, 1], [], []>} : vector<8x128xbf16>, vector<128x128xbf16>, vector<8x128xf32> -> vector<8x128xf32>
    %c0_15 = arith.constant 0 : index
    %c0_16 = arith.constant 0 : index
    %19 = vector.load %arg7[%c0_15, %c0_16] : memref<1x128xf32, #tpu.memory_space<vmem>>, vector<1x128xf32>
    %20 = vector.broadcast %19 : vector<1x128xf32> to vector<8x128xf32>
    %21 = arith.addf %18, %20 : vector<8x128xf32>
    %c0_17 = arith.constant 0 : index
    %c0_18 = arith.constant 0 : index
    %22 = vector.load %arg8[%c0_17, %c0_18] : memref<8x128xf32, #tpu.memory_space<vmem>>, vector<8x128xf32>
    tpu.vector_store %arg8[%c0_17, %c0_18], %21 {strides = array<i32>} : memref<8x128xf32, #tpu.memory_space<vmem>>, vector<8x128xf32>,
    return
  }
  func.func @transform_0(%arg0: i32) -> (i32, i32) {
    %c0_i32 = arith.constant 0 : i32
    %c0_i32_0 = arith.constant 0 : i32
    return %arg0, %c0_i32 : i32, i32
  }
  func.func @transform_1(%arg0: i32) -> (i32, i32) {
    %c0_i32 = arith.constant 0 : i32
    %c0_i32_0 = arith.constant 0 : i32
    %c0_i32_1 = arith.constant 0 : i32
    return %c0_i32, %c0_i32_0 : i32, i32
  }
  func.func @transform_2(%arg0: i32) -> (i32, i32) {
    %c0_i32 = arith.constant 0 : i32
    %c0_i32_0 = arith.constant 0 : i32
    %c0_i32_1 = arith.constant 0 : i32
    return %c0_i32, %c0_i32_0 : i32, i32
  }
  func.func @transform_3(%arg0: i32) -> (i32, i32) {
    %c0_i32 = arith.constant 0 : i32
    %c0_i32_0 = arith.constant 0 : i32
    %c0_i32_1 = arith.constant 0 : i32
    return %c0_i32, %c0_i32_0 : i32, i32
  }
  func.func @transform_4(%arg0: i32) -> (i32, i32) {
    %c0_i32 = arith.constant 0 : i32
    %c0_i32_0 = arith.constant 0 : i32
    %c0_i32_1 = arith.constant 0 : i32
    return %c0_i32, %c0_i32_0 : i32, i32
  }
  func.func @transform_5(%arg0: i32) -> (i32, i32) {
    %c0_i32 = arith.constant 0 : i32
    %c0_i32_0 = arith.constant 0 : i32
    %c0_i32_1 = arith.constant 0 : i32
    return %c0_i32, %c0_i32_0 : i32, i32
  }
  func.func @transform_6(%arg0: i32) -> (i32, i32) {
    %c0_i32 = arith.constant 0 : i32
    %c0_i32_0 = arith.constant 0 : i32
    %c0_i32_1 = arith.constant 0 : i32
    return %c0_i32, %c0_i32_0 : i32, i32
  }
  func.func @transform_7(%arg0: i32) -> (i32, i32) {
    %c0_i32 = arith.constant 0 : i32
    %c0_i32_0 = arith.constant 0 : i32
    return %arg0, %c0_i32 : i32, i32
  }
}

</mosaic_0001>

<bundles_post_ra>
// kernel: lenet_forward.3
= control target key start
LH: loop header
LB: loop body
LE: loop exit
PB: predicated region body
PF: predicated region fallthrough
CT: control target
= control target key end

     0   :  { %v1153_v1 = vmov 0   ;;  %vm136_vm0 = vcmask 654336   ;;  %s1453_s0 = inlined_call_operand.vmem [shape: bf16[4,80,512], index: 0, kind: input, shape index: {}]   ;;  %s1454_s1 = inlined_call_operand.vmem [shape: bf16[6,80], index: 1, kind: input, shape index: {}]   ;;  %s1455_s2 = inlined_call_operand.vmem [shape: f32[6,1], index: 2, kind: input, shape index: {}]   ;;  %s1456_s3 = inlined_call_operand.vmem [shape: bf16[6,512], index: 3, kind: output, shape index: {}]  }
   0x1   :  { %v1033_v0 = vld [vmem:[%s1453_s0 + $0x84] ss:$16 sps:$4 sm:$0xff]   ;;  %172 = vmatprep.mubr.bf16.mxu0 %v1153_v1  ;;  %213 = vmatprep.mubr.bf16.mxu1 %v1153_v1  ;;  %v1035_v2 = vld [vmem:[%s1453_s0 + $0x8c] ss:$16 sps:$4 sm:$0xff]   ;;  %v1037_v3 = vld [vmem:[%s1453_s0 + $0x80] ss:$16 sps:$4 sm:$0xff]  }
   0x2   :  { %1032 = vset.pattern.permute.xlu0 %v1153_v1  ;;  %146 = vmatprep.subr.bf16.mxu0 %v1033_v0  ;;  %v1038_v4 = vld [vmem:[%s1453_s0 + $0x88] ss:$16 sps:$4 sm:$0xff]   ;;  %v1039_v5 = vld [vmem:[%s1453_s0 + $0x64] ss:$16 sps:$4 sm:$0xff]   ;;  %v1041_v6 = vld [vmem:[%s1453_s0 + $0x6c] ss:$16 sps:$4 sm:$0xff]  }
   0x3   :  { %187 = vmatprep.subr.bf16.mxu1 %v1035_v2  ;;  %147 = vmatpush1.bf16.msra.mxu0 %v1037_v3  ;;  %v1043_v7 = vld [vmem:[%s1453_s0 + $0x60] ss:$16 sps:$4 sm:$0xff]   ;;  %v1044_v8 = vld [vmem:[%s1453_s0 + $0x68] ss:$16 sps:$4 sm:$0xff]   ;;  %v1045_v9 = vld [vmem:[%s1453_s0 + $0x44] ss:$16 sps:$4 sm:$0xff]  }
   0x4   :  { %188 = vmatpush1.bf16.msra.mxu1 %v1038_v4  ;;  %148 = vmatprep.subr.bf16.mxu0 %v1039_v5  ;;  %v1047_v10 = vld [vmem:[%s1453_s0 + $0x4c] ss:$16 sps:$4 sm:$0xff]   ;;  %v1049_v11 = vld [vmem:[%s1453_s0 + $0x40] ss:$16 sps:$4 sm:$0xff]   ;;  %v1050_v12 = vld [vmem:[%s1453_s0 + $0x48] ss:$16 sps:$4 sm:$0xff]  }
   0x5   :  { %189 = vmatprep.subr.bf16.mxu1 %v1041_v6  ;;  %v1051_v13 = vld [vmem:[%s1453_s0 + $0x24] ss:$16 sps:$4 sm:$0xff]   ;;  %v1053_v14 = vld [vmem:[%s1453_s0 + $0x2c] ss:$16 sps:$4 sm:$0xff]   ;;  %v1055_v15 = vld [vmem:[%s1453_s0 + $0x20] ss:$16 sps:$4 sm:$0xff]  }
   0x6   :  { %v1056_v16 = vld [vmem:[%s1453_s0 + $0x28] ss:$16 sps:$4 sm:$0xff]   ;;  %v1057_v17 = vld [vmem:[%s1453_s0 + $0x4] ss:$16 sps:$4 sm:$0xff]   ;;  %v1059_v18 = vld [vmem:[%s1453_s0 + $0xc] ss:$16 sps:$4 sm:$0xff]  }
   0x7   :  { %149 = vmatpush1.bf16.msra.mxu0 %v1043_v7  ;;  %v1061_v19 = vld [vmem:[%s1453_s0] ss:$16 sps:$4 sm:$0xff]   ;;  %v1062_v20 = vld [vmem:[%s1453_s0 + $0x8] ss:$16 sps:$4 sm:$0xff]   ;;  %v1065_v21 = vld [vmem:[%s1453_s0 + $0x124] ss:$16 sps:$4 sm:$0xff]  }
   0x8   :  { %190 = vmatpush1.bf16.msra.mxu1 %v1044_v8  ;;  %150 = vmatprep.subr.bf16.mxu0 %v1045_v9  ;;  %v1068_v22 = vld [vmem:[%s1453_s0 + $0x12c] ss:$16 sps:$4 sm:$0xff]   ;;  %v1246_v23 = vld [vmem:[%s1454_s1] sm:$0x7]  ;;  %v1066_v25 = vld [vmem:[%s1453_s0 + $0x128] ss:$16 sps:$4 sm:$0xff]  }
   0x9   :  { %191 = vmatprep.subr.bf16.mxu1 %v1047_v10  ;;  %v1063_v24 = vld [vmem:[%s1453_s0 + $0x120] ss:$16 sps:$4 sm:$0xff]   ;;  %v1071_v26 = vld [vmem:[%s1453_s0 + $0x104] ss:$16 sps:$4 sm:$0xff]   ;;  %v1074_v27 = vld [vmem:[%s1453_s0 + $0x10c] ss:$16 sps:$4 sm:$0xff]  }
   0xa   :  { %v1069_v28 = vld [vmem:[%s1453_s0 + $0x100] ss:$16 sps:$4 sm:$0xff]   ;;  %v1072_v29 = vld [vmem:[%s1453_s0 + $0x108] ss:$16 sps:$4 sm:$0xff]   ;;  %v1077_v30 = vld [vmem:[%s1453_s0 + $0xe4] ss:$16 sps:$4 sm:$0xff]  }
   0xb   :  { %151 = vmatpush1.bf16.msra.mxu0 %v1049_v11  ;;  %v1080_v31 = vld [vmem:[%s1453_s0 + $0xec] ss:$16 sps:$4 sm:$0xff]   ;;  %v1075_v32 = vld [vmem:[%s1453_s0 + $0xe0] ss:$16 sps:$4 sm:$0xff]   ;;  %v1078_v33 = vld [vmem:[%s1453_s0 + $0xe8] ss:$16 sps:$4 sm:$0xff]  }
   0xc   :  { %192 = vmatpush1.bf16.msra.mxu1 %v1050_v12  ;;  %152 = vmatprep.subr.bf16.mxu0 %v1051_v13  ;;  %v1083_v34 = vld [vmem:[%s1453_s0 + $0xc4] ss:$16 sps:$4 sm:$0xff]   ;;  %v1086_v35 = vld [vmem:[%s1453_s0 + $0xcc] ss:$16 sps:$4 sm:$0xff]   ;;  %v1081_v36 = vld [vmem:[%s1453_s0 + $0xc0] ss:$16 sps:$4 sm:$0xff]  }
   0xd   :  { %193 = vmatprep.subr.bf16.mxu1 %v1053_v14  ;;  %v1084_v37 = vld [vmem:[%s1453_s0 + $0xc8] ss:$16 sps:$4 sm:$0xff]   ;;  %v1089_v38 = vld [vmem:[%s1453_s0 + $0xa4] ss:$16 sps:$4 sm:$0xff]   ;;  %v1092_v39 = vld [vmem:[%s1453_s0 + $0xac] ss:$16 sps:$4 sm:$0xff]  }
   0xe   :  { %v1087_v40 = vld [vmem:[%s1453_s0 + $0xa0] ss:$16 sps:$4 sm:$0xff]   ;;  %v1090_v41 = vld [vmem:[%s1453_s0 + $0xa8] ss:$16 sps:$4 sm:$0xff]   ;;  %v1095_v42 = vld [vmem:[%s1453_s0 + $0x1c4] ss:$16 sps:$4 sm:$0xff]  }
   0xf   :  { %153 = vmatpush1.bf16.msra.mxu0 %v1055_v15  ;;  %v1098_v43 = vld [vmem:[%s1453_s0 + $0x1cc] ss:$16 sps:$4 sm:$0xff]   ;;  %v1093_v44 = vld [vmem:[%s1453_s0 + $0x1c0] ss:$16 sps:$4 sm:$0xff]   ;;  %v1096_v45 = vld [vmem:[%s1453_s0 + $0x1c8] ss:$16 sps:$4 sm:$0xff]  }
  0x10   :  { %194 = vmatpush1.bf16.msra.mxu1 %v1056_v16  ;;  %154 = vmatprep.subr.bf16.mxu0 %v1057_v17  ;;  %v1101_v46 = vld [vmem:[%s1453_s0 + $0x1a4] ss:$16 sps:$4 sm:$0xff]   ;;  %v1104_v47 = vld [vmem:[%s1453_s0 + $0x1ac] ss:$16 sps:$4 sm:$0xff]   ;;  %v1099_v48 = vld [vmem:[%s1453_s0 + $0x1a0] ss:$16 sps:$4 sm:$0xff]  }
  0x11   :  { %195 = vmatprep.subr.bf16.mxu1 %v1059_v18  ;;  %v1102_v49 = vld [vmem:[%s1453_s0 + $0x1a8] ss:$16 sps:$4 sm:$0xff]   ;;  %v1107_v50 = vld [vmem:[%s1453_s0 + $0x184] ss:$16 sps:$4 sm:$0xff]   ;;  %v1110_v51 = vld [vmem:[%s1453_s0 + $0x18c] ss:$16 sps:$4 sm:$0xff]  }
  0x12   :  { %v1105_v52 = vld [vmem:[%s1453_s0 + $0x180] ss:$16 sps:$4 sm:$0xff]   ;;  %v1108_v53 = vld [vmem:[%s1453_s0 + $0x188] ss:$16 sps:$4 sm:$0xff]   ;;  %v1113_v54 = vld [vmem:[%s1453_s0 + $0x164] ss:$16 sps:$4 sm:$0xff]  }
  0x13   :  { %155 = vmatpush1.bf16.msra.mxu0 %v1061_v19  ;;  %v1116_v55 = vld [vmem:[%s1453_s0 + $0x16c] ss:$16 sps:$4 sm:$0xff]   ;;  %v1111_v56 = vld [vmem:[%s1453_s0 + $0x160] ss:$16 sps:$4 sm:$0xff]   ;;  %v1114_v57 = vld [vmem:[%s1453_s0 + $0x168] ss:$16 sps:$4 sm:$0xff]  }
  0x14   :  { %196 = vmatpush1.bf16.msra.mxu1 %v1062_v20  ;;  %349 = vmatprep.subr.bf16.mxu0 %v1065_v21  ;;  %v1119_v58 = vld [vmem:[%s1453_s0 + $0x144] ss:$16 sps:$4 sm:$0xff]   ;;  %v1122_v59 = vld [vmem:[%s1453_s0 + $0x14c] ss:$16 sps:$4 sm:$0xff]   ;;  %v1117_v61 = vld [vmem:[%s1453_s0 + $0x140] ss:$16 sps:$4 sm:$0xff]  }
  0x15   :  { %390 = vmatprep.subr.bf16.mxu1 %v1068_v22  ;;  %v843_v60 = vld [vmem:[%s1455_s2] sm:$0x3f]  ;;  %v1120_v62 = vld [vmem:[%s1453_s0 + $0x148] ss:$16 sps:$4 sm:$0xff]   ;;  %v1128_v0 = vld [vmem:[%s1453_s0 + $0x26c] ss:$16 sps:$4 sm:$0xff]  }
  0x16   :  { %899 = vmatmul.mubr.msk.bf16.vlgmr.msra.gmra.mxu0 %vm136_vm0, %v1246_v23  ;;  %846 = vperm.xlu0 %1032, %v843_v60   ;;  %v1125_v63 = vld [vmem:[%s1453_s0 + $0x264] ss:$16 sps:$4 sm:$0xff]   ;;  %v1123_v2 = vld [vmem:[%s1453_s0 + $0x260] ss:$16 sps:$4 sm:$0xff]   ;;  %v1126_v3 = vld [vmem:[%s1453_s0 + $0x268] ss:$16 sps:$4 sm:$0xff]  }
  0x17   :  { %900 = vmatmul.mubr.msk.bf16.vlgmr.msra.gmra.mxu1 %vm136_vm0, %v1246_v23  ;;  %350 = vmatpush1.bf16.msra.mxu0 %v1063_v24  ;;  %v1131_v4 = vld [vmem:[%s1453_s0 + $0x244] ss:$16 sps:$4 sm:$0xff]   ;;  %v1134_v5 = vld [vmem:[%s1453_s0 + $0x24c] ss:$16 sps:$4 sm:$0xff]   ;;  %v1129_v6 = vld [vmem:[%s1453_s0 + $0x240] ss:$16 sps:$4 sm:$0xff]  }
  0x18   :  { %391 = vmatpush1.bf16.msra.mxu1 %v1066_v25  ;;  %351 = vmatprep.subr.bf16.mxu0 %v1071_v26  ;;  %v1132_v7 = vld [vmem:[%s1453_s0 + $0x248] ss:$16 sps:$4 sm:$0xff]   ;;  %v1137_v8 = vld [vmem:[%s1453_s0 + $0x224] ss:$16 sps:$4 sm:$0xff]   ;;  %v1140_v9 = vld [vmem:[%s1453_s0 + $0x22c] ss:$16 sps:$4 sm:$0xff]  }
  0x19   :  { %392 = vmatprep.subr.bf16.mxu1 %v1074_v27  ;;  %375 = vmatprep.mubr.bf16.mxu0 %v1153_v1  ;;  %v1135_v10 = vld [vmem:[%s1453_s0 + $0x220] ss:$16 sps:$4 sm:$0xff]   ;;  %v1138_v11 = vld [vmem:[%s1453_s0 + $0x228] ss:$16 sps:$4 sm:$0xff]   ;;  %v1143_v12 = vld [vmem:[%s1453_s0 + $0x204] ss:$16 sps:$4 sm:$0xff]  }
  0x1a   :  { %416 = vmatprep.mubr.bf16.mxu1 %v1153_v1  ;;  %v1141_v13 = vld [vmem:[%s1453_s0 + $0x200] ss:$16 sps:$4 sm:$0xff]   ;;  %v1144_v14 = vld [vmem:[%s1453_s0 + $0x208] ss:$16 sps:$4 sm:$0xff]   ;;  %v1149_v15 = vld [vmem:[%s1453_s0 + $0x1e4] ss:$16 sps:$4 sm:$0xff]  }
  0x1b   :  { %352 = vmatpush1.bf16.msra.mxu0 %v1069_v28  ;;  %v1152_v16 = vld [vmem:[%s1453_s0 + $0x1ec] ss:$16 sps:$4 sm:$0xff]   ;;  %v1147_v17 = vld [vmem:[%s1453_s0 + $0x1e0] ss:$16 sps:$4 sm:$0xff]   ;;  %v1150_v18 = vld [vmem:[%s1453_s0 + $0x1e8] ss:$16 sps:$4 sm:$0xff]  }
  0x1c   :  { %393 = vmatpush1.bf16.msra.mxu1 %v1072_v29  ;;  %353 = vmatprep.subr.bf16.mxu0 %v1077_v30 }
  0x1d   :  { %394 = vmatprep.subr.bf16.mxu1 %v1080_v31 }
  0x1f   :  { %354 = vmatpush1.bf16.msra.mxu0 %v1075_v32 }
  0x20   :  { %395 = vmatpush1.bf16.msra.mxu1 %v1078_v33  ;;  %355 = vmatprep.subr.bf16.mxu0 %v1083_v34 }
  0x21   :  { %396 = vmatprep.subr.bf16.mxu1 %v1086_v35 }
  0x23   :  { %356 = vmatpush1.bf16.msra.mxu0 %v1081_v36 }
  0x24   :  { %397 = vmatpush1.bf16.msra.mxu1 %v1084_v37  ;;  %357 = vmatprep.subr.bf16.mxu0 %v1089_v38 }
  0x25   :  { %398 = vmatprep.subr.bf16.mxu1 %v1092_v39 }
  0x27   :  { %358 = vmatpush1.bf16.msra.mxu0 %v1087_v40 }
  0x28   :  { %399 = vmatpush1.bf16.msra.mxu1 %v1090_v41  ;;  %556 = vmatprep.subr.bf16.mxu0 %v1095_v42 }
  0x29   :  { %597 = vmatprep.subr.bf16.mxu1 %v1098_v43 }
  0x2a   :  { %941 = vmatmul.mubr.msk.bf16.vlgmr.msra.gmra.mxu0 %vm136_vm0, %v1246_v23 }
  0x2b   :  { %942 = vmatmul.mubr.msk.bf16.vlgmr.msra.gmra.mxu1 %vm136_vm0, %v1246_v23  ;;  %557 = vmatpush1.bf16.msra.mxu0 %v1093_v44 }
  0x2c   :  { %598 = vmatpush1.bf16.msra.mxu1 %v1096_v45  ;;  %558 = vmatprep.subr.bf16.mxu0 %v1101_v46 }
  0x2d   :  { %599 = vmatprep.subr.bf16.mxu1 %v1104_v47  ;;  %582 = vmatprep.mubr.bf16.mxu0 %v1153_v1 }
  0x2e   :  { %623 = vmatprep.mubr.bf16.mxu1 %v1153_v1 }
  0x2f   :  { %559 = vmatpush1.bf16.msra.mxu0 %v1099_v48 }
  0x30   :  { %600 = vmatpush1.bf16.msra.mxu1 %v1102_v49  ;;  %560 = vmatprep.subr.bf16.mxu0 %v1107_v50 }
  0x31   :  { %601 = vmatprep.subr.bf16.mxu1 %v1110_v51 }
  0x33   :  { %561 = vmatpush1.bf16.msra.mxu0 %v1105_v52 }
  0x34   :  { %602 = vmatpush1.bf16.msra.mxu1 %v1108_v53  ;;  %562 = vmatprep.subr.bf16.mxu0 %v1113_v54 }
  0x35   :  { %603 = vmatprep.subr.bf16.mxu1 %v1116_v55 }
  0x37   :  { %563 = vmatpush1.bf16.msra.mxu0 %v1111_v56 }
  0x38   :  { %604 = vmatpush1.bf16.msra.mxu1 %v1114_v57  ;;  %564 = vmatprep.subr.bf16.mxu0 %v1119_v58 }
  0x39   :  { %605 = vmatprep.subr.bf16.mxu1 %v1122_v59 }
  0x3b   :  { %565 = vmatpush1.bf16.msra.mxu0 %v1117_v61 }
  0x3c   :  { %606 = vmatpush1.bf16.msra.mxu1 %v1120_v62  ;;  %759 = vmatprep.subr.bf16.mxu0 %v1125_v63 }
  0x3d   :  { %800 = vmatprep.subr.bf16.mxu1 %v1128_v0 }
  0x3e   :  { %983 = vmatmul.mubr.msk.bf16.vlgmr.msra.gmra.mxu0 %vm136_vm0, %v1246_v23 }
  0x3f   :  { %984 = vmatmul.mubr.msk.bf16.vlgmr.msra.gmra.mxu1 %vm136_vm0, %v1246_v23  ;;  %760 = vmatpush1.bf16.msra.mxu0 %v1123_v2 }
  0x40   :  { %801 = vmatpush1.bf16.msra.mxu1 %v1126_v3  ;;  %761 = vmatprep.subr.bf16.mxu0 %v1131_v4 }
  0x41   :  { %802 = vmatprep.subr.bf16.mxu1 %v1134_v5  ;;  %785 = vmatprep.mubr.bf16.mxu0 %v1153_v1 }
  0x42   :  { %826 = vmatprep.mubr.bf16.mxu1 %v1153_v1  ;;  %v1146_v1 = vld [vmem:[%s1453_s0 + $0x20c] ss:$16 sps:$4 sm:$0xff]  }
  0x43   :  { %762 = vmatpush1.bf16.msra.mxu0 %v1129_v6 }
  0x44   :  { %803 = vmatpush1.bf16.msra.mxu1 %v1132_v7  ;;  %763 = vmatprep.subr.bf16.mxu0 %v1137_v8 }
  0x45   :  { %804 = vmatprep.subr.bf16.mxu1 %v1140_v9 }
  0x47   :  { %764 = vmatpush1.bf16.msra.mxu0 %v1135_v10 }
  0x48   :  { %805 = vmatpush1.bf16.msra.mxu1 %v1138_v11  ;;  %765 = vmatprep.subr.bf16.mxu0 %v1143_v12 }
  0x49   :  { %806 = vmatprep.subr.bf16.mxu1 %v1146_v1 }
  0x4b   :  { %766 = vmatpush1.bf16.msra.mxu0 %v1141_v13 }
  0x4c   :  { %807 = vmatpush1.bf16.msra.mxu1 %v1144_v14  ;;  %767 = vmatprep.subr.bf16.mxu0 %v1149_v15 }
  0x4d   :  { %808 = vmatprep.subr.bf16.mxu1 %v1152_v16 }
  0x4f   :  { %768 = vmatpush1.bf16.msra.mxu0 %v1147_v17 }
  0x50   :  { %809 = vmatpush1.bf16.msra.mxu1 %v1150_v18 }
  0x52   :  { %1025 = vmatmul.mubr.msk.bf16.vlgmr.msra.gmra.mxu0 %vm136_vm0, %v1246_v23 }
  0x53   :  { %1026 = vmatmul.mubr.msk.bf16.vlgmr.msra.gmra.mxu1 %vm136_vm0, %v1246_v23 }
  0x91   :  { %v847_v49 = vpop.permute.xlu0 %846 }
  0xd6   :  { %v174_v19 = vpop.f32.mrf.mxu0 }
  0xd7   :  { %v215_v20 = vpop.f32.mrf.mxu1 }
  0xd8   :  { %v176_v21 = vpop.f32.mrf.mxu0 }
  0xd9   :  { %v217_v22 = vpop.f32.mrf.mxu1 }
  0xda   :  { %v178_v24 = vpop.f32.mrf.mxu0 }
  0xdb   :  { %v219_v25 = vpop.f32.mrf.mxu1 }
  0xdc   :  { %v179_v26 = vpop.f32.mrf.mxu0 }
  0xdd   :  { %v220_v27 = vpop.f32.mrf.mxu1 }
  0xea   :  { %v377_v28 = vpop.f32.mrf.mxu0 }
  0xeb   :  { %v418_v29 = vpop.f32.mrf.mxu1  ;;  %v425_v45 = vmax.f32 %v174_v19, %v377_v28 }
  0xec   :  { %v379_v30 = vpop.f32.mrf.mxu0  ;;  %v427_v46 = vmax.f32 %v215_v20, %v418_v29 }
  0xed   :  { %v420_v31 = vpop.f32.mrf.mxu1  ;;  %v426_v50 = vmax.f32 %v176_v21, %v379_v30 }
  0xee   :  { %v381_v32 = vpop.f32.mrf.mxu0  ;;  %v428_v51 = vmax.f32 %v217_v22, %v420_v31 }
  0xef   :  { %v422_v33 = vpop.f32.mrf.mxu1 }
  0xf0   :  { %v382_v34 = vpop.f32.mrf.mxu0 }
  0xf1   :  { %v423_v35 = vpop.f32.mrf.mxu1 }
  0xfe   :  { %v584_v36 = vpop.f32.mrf.mxu0 }
  0xff   :  { %v625_v37 = vpop.f32.mrf.mxu1 }
 0x100   :  { %v586_v38 = vpop.f32.mrf.mxu0 }
 0x101   :  { %v627_v23 = vpop.f32.mrf.mxu1 }
 0x102   :  { %v588_v39 = vpop.f32.mrf.mxu0 }
 0x103   :  { %v629_v40 = vpop.f32.mrf.mxu1 }
 0x104   :  { %v589_v41 = vpop.f32.mrf.mxu0 }
 0x105   :  { %v630_v42 = vpop.f32.mrf.mxu1 }
 0x112   :  { %v787_v43 = vpop.f32.mrf.mxu0 }
 0x113   :  { %v828_v44 = vpop.f32.mrf.mxu1  ;;  %v835_v47 = vmax.f32 %v584_v36, %v787_v43 }
 0x114   :  { %v837_v48 = vmax.f32 %v625_v37, %v828_v44  ;;  %v789_v52 = vpop.f32.mrf.mxu0 }
 0x115   :  { %v830_v53 = vpop.f32.mrf.mxu1  ;;  %v839_v54 = vmax.f32 %v425_v45, %v835_v47  ;;  %v836_v56 = vmax.f32 %v586_v38, %v789_v52 }
 0x116   :  { %v841_v55 = vmax.f32 %v427_v46, %v837_v48  ;;  %v838_v57 = vmax.f32 %v627_v23, %v830_v53  ;;  %v791_v58 = vpop.f32.mrf.mxu0 }
 0x117   :  { %v832_v59 = vpop.f32.mrf.mxu1  ;;  %v840_v60 = vmax.f32 %v426_v50, %v836_v56  ;;  %v849_v62 = vadd.f32 %v847_v49, %v839_v54 }
 0x118   :  { %v842_v61 = vmax.f32 %v428_v51, %v838_v57  ;;  %v851_v63 = vadd.f32 %v847_v49, %v841_v55  ;;  %v792_v0 = vpop.f32.mrf.mxu0 }
 0x119   :  { %v833_v2 = vpop.f32.mrf.mxu1  ;;  %v850_v3 = vadd.f32 %v847_v49, %v840_v60  ;;  %v853_v5 = vmax.f32 %v849_v62, 0.0 }
 0x11a   :  { %v852_v4 = vadd.f32 %v847_v49, %v842_v61  ;;  %v855_v7 = vmax.f32 %v851_v63, 0.0 }
 0x11b   :  { %v854_v6 = vmax.f32 %v850_v3, 0.0 }
 0x11c   :  { %v856_v8 = vmax.f32 %v852_v4, 0.0 }
 0x11d   :  { %v1029_v9 = vpack.c.bf16 %v854_v6, %v853_v5 }
 0x11e   :  { %v1030_v10 = vpack.c.bf16 %v856_v8, %v855_v7 }
 0x11f   :  { %873 = vst [vmem:[%s1456_s3] sm:$0x77] %v1029_v9 }
 0x120   :  { %874 = vst [vmem:[%s1456_s3 + $0x8] sm:$0x77] %v1030_v10 }

// kernel: lenet_forward.4
= control target key start
LH: loop header
LB: loop body
LE: loop exit
PB: predicated region body
PF: predicated region fallthrough
CT: control target
= control target key end

     0   :  { %v713_v0 = vmov 0   ;;  %vm106_vm0 = vcmask 261120   ;;  %s920_s0 = inlined_call_operand.vmem [shape: bf16[4,160,128], index: 0, kind: input, shape index: {}]   ;;  %s921_s1 = inlined_call_operand.vmem [shape: bf16[16,160], index: 1, kind: input, shape index: {}]   ;;  %s922_s2 = inlined_call_operand.vmem [shape: f32[16,1], index: 2, kind: input, shape index: {}]   ;;  %s923_s3 = inlined_call_operand.vmem [shape: bf16[16,128], index: 3, kind: output, shape index: {}]  }
   0x1   :  { %110 = vmatprep.subr.bf16.mxu0 %v713_v0  ;;  %232 = vmatprep.subr.bf16.mxu1 %v713_v0  ;;  %v670_v1 = vld [vmem:[%s920_s0 + $0x38] sm:$0xff]   ;;  %v671_v2 = vld [vmem:[%s920_s0 + $0x88] sm:$0xff]   ;;  %v672_v3 = vld [vmem:[%s920_s0 + $0x30] sm:$0xff]  }
   0x2   :  { %669 = vset.pattern.permute.xlu0 %v713_v0  ;;  %111 = vmatpush1.bf16.msra.mxu0 %v670_v1  ;;  %v673_v4 = vld [vmem:[%s920_s0 + $0x80] sm:$0xff]   ;;  %v674_v5 = vld [vmem:[%s920_s0 + $0x28] sm:$0xff]   ;;  %v675_v6 = vld [vmem:[%s920_s0 + $0x78] sm:$0xff]  }
   0x3   :  { %233 = vmatpush1.bf16.msra.mxu1 %v671_v2  ;;  %112 = vmatprep.subr.bf16.mxu0 %v713_v0  ;;  %v676_v7 = vld [vmem:[%s920_s0 + $0x20] sm:$0xff]   ;;  %v677_v8 = vld [vmem:[%s920_s0 + $0x70] sm:$0xff]   ;;  %v678_v9 = vld [vmem:[%s920_s0 + $0x18] sm:$0xff]  }
   0x4   :  { %234 = vmatprep.subr.bf16.mxu1 %v713_v0  ;;  %v679_v10 = vld [vmem:[%s920_s0 + $0x68] sm:$0xff]   ;;  %v680_v11 = vld [vmem:[%s920_s0 + $0x10] sm:$0xff]   ;;  %v681_v12 = vld [vmem:[%s920_s0 + $0x60] sm:$0xff]  }
   0x5   :  { %v690_v13 = vld [vmem:[%s921_s1 + $0x4] ss:$8 sps:$4 sm:$0xff]   ;;  %v683_v15 = vld [vmem:[%s920_s0 + $0x58] sm:$0xff]   ;;  %v685_v17 = vld [vmem:[%s920_s0 + $0x50] sm:$0xff]  }
   0x6   :  { %113 = vmatpush1.bf16.msra.mxu0 %v672_v3  ;;  %v682_v14 = vld [vmem:[%s920_s0 + $0x8] sm:$0xff]   ;;  %565 = vmatprep.mubr.msk.bf16.mxu0 %vm106_vm0, %v690_v13  ;;  %v684_v16 = vld [vmem:[%s920_s0] sm:$0xff]   ;;  %v687_v19 = vld [vmem:[%s920_s0 + $0x98] sm:$0xff]  }
   0x7   :  { %235 = vmatpush1.bf16.msra.mxu1 %v673_v4  ;;  %114 = vmatprep.subr.bf16.mxu0 %v713_v0  ;;  %v686_v18 = vld [vmem:[%s920_s0 + $0x48] sm:$0xff]   ;;  %v688_v20 = vld [vmem:[%s920_s0 + $0x40] sm:$0xff]   ;;  %v689_v21 = vld [vmem:[%s920_s0 + $0x90] sm:$0xff]  }
   0x8   :  { %236 = vmatprep.subr.bf16.mxu1 %v713_v0  ;;  %596 = vmatprep.mubr.msk.bf16.mxu1 %vm106_vm0, %v690_v13  ;;  %v823_v22 = vld [vmem:[%s921_s1] ss:$8 sps:$4 sm:$0xff]   ;;  %v693_v23 = vld [vmem:[%s920_s0 + $0xd8] sm:$0xff]   ;;  %v695_v25 = vld [vmem:[%s920_s0 + $0xd0] sm:$0xff]  }
   0x9   :  { %v694_v24 = vld [vmem:[%s920_s0 + $0x128] sm:$0xff]   ;;  %v523_v26 = vld [vmem:[%s922_s2] sm:$0xff]  ;;  %v698_v30 = vld [vmem:[%s920_s0 + $0x118] sm:$0xff]  }
   0xa   :  { %115 = vmatpush1.bf16.msra.mxu0 %v674_v5  ;;  %v696_v27 = vld [vmem:[%s920_s0 + $0x120] sm:$0xff]   ;;  %527 = vperm.xlu0 %669, %v523_v26   ;;  %v697_v28 = vld [vmem:[%s920_s0 + $0xc8] sm:$0xff]   ;;  %v700_v32 = vld [vmem:[%s920_s0 + $0x110] sm:$0xff]  }
   0xb   :  { %237 = vmatpush1.bf16.msra.mxu1 %v675_v6  ;;  %116 = vmatprep.subr.bf16.mxu0 %v713_v0  ;;  %v524_v29 = vld [vmem:[%s922_s2 + $0x8] sm:$0xff]  ;;  %v699_v31 = vld [vmem:[%s920_s0 + $0xc0] sm:$0xff]   ;;  %v701_v33 = vld [vmem:[%s920_s0 + $0xb8] sm:$0xff]  }
   0xc   :  { %238 = vmatprep.subr.bf16.mxu1 %v713_v0  ;;  %v702_v34 = vld [vmem:[%s920_s0 + $0x108] sm:$0xff]   ;;  %v703_v35 = vld [vmem:[%s920_s0 + $0xb0] sm:$0xff]   ;;  %v704_v36 = vld [vmem:[%s920_s0 + $0x100] sm:$0xff]  }
   0xd   :  { %v705_v37 = vld [vmem:[%s920_s0 + $0xa8] sm:$0xff]   ;;  %v706_v38 = vld [vmem:[%s920_s0 + $0xf8] sm:$0xff]   ;;  %v707_v39 = vld [vmem:[%s920_s0 + $0xa0] sm:$0xff]  }
   0xe   :  { %117 = vmatpush1.bf16.msra.mxu0 %v676_v7  ;;  %532 = vperm.xlu0 %669, %v524_v29   ;;  %v708_v40 = vld [vmem:[%s920_s0 + $0xf0] sm:$0xff]   ;;  %v709_v41 = vld [vmem:[%s920_s0 + $0xe8] sm:$0xff]   ;;  %v710_v42 = vld [vmem:[%s920_s0 + $0x138] sm:$0xff]  }
   0xf   :  { %239 = vmatpush1.bf16.msra.mxu1 %v677_v8  ;;  %118 = vmatprep.subr.bf16.mxu0 %v713_v0  ;;  %v711_v43 = vld [vmem:[%s920_s0 + $0xe0] sm:$0xff]   ;;  %v712_v44 = vld [vmem:[%s920_s0 + $0x130] sm:$0xff]  }
  0x10   :  { %240 = vmatprep.subr.bf16.mxu1 %v713_v0 }
  0x12   :  { %119 = vmatpush1.bf16.msra.mxu0 %v678_v9 }
  0x13   :  { %241 = vmatpush1.bf16.msra.mxu1 %v679_v10  ;;  %120 = vmatprep.subr.bf16.mxu0 %v713_v0 }
  0x14   :  { %242 = vmatprep.subr.bf16.mxu1 %v713_v0 }
  0x16   :  { %121 = vmatpush1.bf16.msra.mxu0 %v680_v11 }
  0x17   :  { %243 = vmatpush1.bf16.msra.mxu1 %v681_v12  ;;  %122 = vmatprep.subr.bf16.mxu0 %v713_v0 }
  0x18   :  { %244 = vmatprep.subr.bf16.mxu1 %v713_v0 }
  0x1a   :  { %123 = vmatpush1.bf16.msra.mxu0 %v682_v14 }
  0x1b   :  { %245 = vmatpush1.bf16.msra.mxu1 %v683_v15  ;;  %124 = vmatprep.subr.bf16.mxu0 %v713_v0 }
  0x1c   :  { %246 = vmatprep.subr.bf16.mxu1 %v713_v0 }
  0x1e   :  { %125 = vmatpush1.bf16.msra.mxu0 %v684_v16 }
  0x1f   :  { %247 = vmatpush1.bf16.msra.mxu1 %v685_v17  ;;  %138 = vmatprep.subr.bf16.mxu0 %v713_v0 }
  0x20   :  { %260 = vmatprep.subr.bf16.mxu1 %v713_v0 }
  0x22   :  { %139 = vmatpush2.bf16.msra.mxu0 %v686_v18 }
  0x23   :  { %261 = vmatpush2.bf16.msra.mxu1 %v687_v19  ;;  %140 = vmatprep.subr.bf16.mxu0 %v713_v0 }
  0x24   :  { %262 = vmatprep.subr.bf16.mxu1 %v713_v0 }
  0x26   :  { %141 = vmatpush2.bf16.msra.mxu0 %v688_v20 }
  0x27   :  { %263 = vmatpush2.bf16.msra.mxu1 %v689_v21  ;;  %356 = vmatprep.subr.bf16.mxu0 %v713_v0 }
  0x28   :  { %478 = vmatprep.subr.bf16.mxu1 %v713_v0 }
  0x29   :  { %143 = vmatmul.mubr.bf16.vlgmr.msra.gmra.mxu0 %v823_v22 }
  0x2a   :  { %265 = vmatmul.mubr.bf16.vlgmr.msra.gmra.mxu1 %v823_v22  ;;  %357 = vmatpush1.bf16.msra.mxu0 %v693_v23 }
  0x2b   :  { %479 = vmatpush1.bf16.msra.mxu1 %v694_v24  ;;  %358 = vmatprep.subr.bf16.mxu0 %v713_v0 }
  0x2c   :  { %480 = vmatprep.subr.bf16.mxu1 %v713_v0  ;;  %627 = vmatprep.mubr.msk.bf16.mxu0 %vm106_vm0, %v690_v13 }
  0x2d   :  { %658 = vmatprep.mubr.msk.bf16.mxu1 %vm106_vm0, %v690_v13 }
  0x2e   :  { %359 = vmatpush1.bf16.msra.mxu0 %v695_v25 }
  0x2f   :  { %481 = vmatpush1.bf16.msra.mxu1 %v696_v27  ;;  %360 = vmatprep.subr.bf16.mxu0 %v713_v0 }
  0x30   :  { %482 = vmatprep.subr.bf16.mxu1 %v713_v0 }
  0x32   :  { %361 = vmatpush1.bf16.msra.mxu0 %v697_v28 }
  0x33   :  { %483 = vmatpush1.bf16.msra.mxu1 %v698_v30  ;;  %362 = vmatprep.subr.bf16.mxu0 %v713_v0 }
  0x34   :  { %484 = vmatprep.subr.bf16.mxu1 %v713_v0 }
  0x36   :  { %363 = vmatpush1.bf16.msra.mxu0 %v699_v31 }
  0x37   :  { %485 = vmatpush1.bf16.msra.mxu1 %v700_v32  ;;  %364 = vmatprep.subr.bf16.mxu0 %v713_v0 }
  0x38   :  { %486 = vmatprep.subr.bf16.mxu1 %v713_v0 }
  0x3a   :  { %365 = vmatpush1.bf16.msra.mxu0 %v701_v33 }
  0x3b   :  { %487 = vmatpush1.bf16.msra.mxu1 %v702_v34  ;;  %366 = vmatprep.subr.bf16.mxu0 %v713_v0 }
  0x3c   :  { %488 = vmatprep.subr.bf16.mxu1 %v713_v0 }
  0x3e   :  { %367 = vmatpush1.bf16.msra.mxu0 %v703_v35 }
  0x3f   :  { %489 = vmatpush1.bf16.msra.mxu1 %v704_v36  ;;  %368 = vmatprep.subr.bf16.mxu0 %v713_v0 }
  0x40   :  { %490 = vmatprep.subr.bf16.mxu1 %v713_v0 }
  0x42   :  { %369 = vmatpush1.bf16.msra.mxu0 %v705_v37 }
  0x43   :  { %491 = vmatpush1.bf16.msra.mxu1 %v706_v38  ;;  %370 = vmatprep.subr.bf16.mxu0 %v713_v0 }
  0x44   :  { %492 = vmatprep.subr.bf16.mxu1 %v713_v0 }
  0x46   :  { %371 = vmatpush1.bf16.msra.mxu0 %v707_v39 }
  0x47   :  { %493 = vmatpush1.bf16.msra.mxu1 %v708_v40  ;;  %384 = vmatprep.subr.bf16.mxu0 %v713_v0 }
  0x48   :  { %506 = vmatprep.subr.bf16.mxu1 %v713_v0 }
  0x4a   :  { %385 = vmatpush2.bf16.msra.mxu0 %v709_v41 }
  0x4b   :  { %507 = vmatpush2.bf16.msra.mxu1 %v710_v42  ;;  %386 = vmatprep.subr.bf16.mxu0 %v713_v0 }
  0x4c   :  { %508 = vmatprep.subr.bf16.mxu1 %v713_v0 }
  0x4e   :  { %387 = vmatpush2.bf16.msra.mxu0 %v711_v43 }
  0x4f   :  { %509 = vmatpush2.bf16.msra.mxu1 %v712_v44 }
  0x51   :  { %389 = vmatmul.mubr.bf16.vlgmr.msra.gmra.mxu0 %v823_v22 }
  0x52   :  { %511 = vmatmul.mubr.bf16.vlgmr.msra.gmra.mxu1 %v823_v22 }
  0x85   :  { %v528_v58 = vpop.permute.xlu0 %527 }
  0x89   :  { %v533_v5 = vpop.permute.xlu0 %532 }
  0xe9   :  { %v144_v45 = vpop.f32.mrf.mxu0 }
  0xea   :  { %v266_v46 = vpop.f32.mrf.mxu1 }
  0xeb   :  { %v146_v47 = vpop.f32.mrf.mxu0  ;;  %v273_v55 = vmax.f32 %v144_v45, %v266_v46 }
  0xec   :  { %v268_v48 = vpop.f32.mrf.mxu1 }
  0xed   :  { %v147_v49 = vpop.f32.mrf.mxu0 }
  0xee   :  { %v269_v50 = vpop.f32.mrf.mxu1 }
  0xef   :  { %v149_v51 = vpop.f32.mrf.mxu0  ;;  %v274_v63 = vmax.f32 %v147_v49, %v269_v50 }
  0xf0   :  { %v271_v52 = vpop.f32.mrf.mxu1 }
 0x111   :  { %v390_v53 = vpop.f32.mrf.mxu0 }
 0x112   :  { %v512_v54 = vpop.f32.mrf.mxu1 }
 0x113   :  { %v519_v56 = vmax.f32 %v390_v53, %v512_v54  ;;  %v392_v57 = vpop.f32.mrf.mxu0 }
 0x114   :  { %v514_v59 = vpop.f32.mrf.mxu1 }
 0x115   :  { %v521_v60 = vmax.f32 %v273_v55, %v519_v56  ;;  %v393_v61 = vpop.f32.mrf.mxu0 }
 0x116   :  { %v515_v62 = vpop.f32.mrf.mxu1 }
 0x117   :  { %v520_v0 = vmax.f32 %v393_v61, %v515_v62  ;;  %v395_v1 = vpop.f32.mrf.mxu0  ;;  %v535_v3 = vadd.f32 %v528_v58, %v521_v60 }
 0x118   :  { %v517_v2 = vpop.f32.mrf.mxu1 }
 0x119   :  { %v522_v4 = vmax.f32 %v274_v63, %v520_v0  ;;  %v537_v7 = vmax.f32 %v535_v3, 0.0 }
 0x11b   :  { %v536_v6 = vadd.f32 %v533_v5, %v522_v4 }
 0x11d   :  { %v538_v8 = vmax.f32 %v536_v6, 0.0 }
 0x11f   :  { %v666_v9 = vpack.c.bf16 %v538_v8, %v537_v7 }
 0x121   :  { %667 = vst [vmem:[%s923_s3] sm:$0xff] %v666_v9  }

// kernel: lenet_forward.5
= control target key start
LH: loop header
LB: loop body
LE: loop exit
PB: predicated region body
PF: predicated region fallthrough
CT: control target
= control target key end

     0   :  { %v741_v0 = vmov 0   ;;  %vm249_vm0 = vcmask 130048   ;;  %v742_v32 = vmov 0.0   ;;  %vm743_vm1 = vmmov 0   ;;  %s952_s1 = inlined_call_operand.vmem [shape: bf16[400,128], index: 1, kind: input, shape index: {}]   ;;  %s953_s0 = inlined_call_operand.vmem [shape: bf16[8,400], index: 0, kind: input, shape index: {}]   ;;  %s954_s3 = inlined_call_operand.vmem [shape: bf16[128,128], index: 3, kind: input, shape index: {}]   ;;  %s955_s5 = inlined_call_operand.vmem [shape: bf16[128,128], index: 5, kind: input, shape index: {}]   ;;  %s956_s2 = inlined_call_operand.vmem [shape: f32[1,128], index: 2, kind: input, shape index: {}]   ;;  %s957_s4 = inlined_call_operand.vmem [shape: f32[1,128], index: 4, kind: input, shape index: {}]   ;;  %s958_s6 = inlined_call_operand.vmem [shape: f32[1,128], index: 6, kind: input, shape index: {}]   ;;  %s959_s7 = inlined_call_operand.vmem [shape: f32[8,128], index: 7, kind: output, shape index: {}]  }
   0x1   :  { %293 = vmatprep.subr.bf16.mxu1 %v741_v0  ;;  %v696_v1 = vld [vmem:[%s952_s1 + $0x78] sm:$0xff]   ;;  %v699_v4 = vld [vmem:[%s952_s1 + $0x70] sm:$0xff]   ;;  %v702_v7 = vld [vmem:[%s952_s1 + $0x68] sm:$0xff]  }
   0x2   :  { %v697_v2 = vld [vmem:[%s952_s1 + $0xb8] sm:$0xff]   ;;  %613 = vmatprep.subr.bf16.mxu0 %v696_v1  ;;  %v700_v5 = vld [vmem:[%s952_s1 + $0xb0] sm:$0xff]   ;;  %v703_v8 = vld [vmem:[%s952_s1 + $0xa8] sm:$0xff]  }
   0x3   :  { %v698_v3 = vld [vmem:[%s952_s1 + $0x38] sm:$0xff]   ;;  %294 = vmatpush1.bf16.msra.mxu1 %v697_v2  ;;  %v701_v6 = vld [vmem:[%s952_s1 + $0x30] sm:$0xff]   ;;  %v704_v9 = vld [vmem:[%s952_s1 + $0x28] sm:$0xff]  }
   0x4   :  { %614 = vmatpush3.bf16.msra.mxu0 %v698_v3  ;;  %295 = vmatprep.subr.bf16.mxu1 %v741_v0  ;;  %v705_v10 = vld [vmem:[%s952_s1 + $0x60] sm:$0xff]   ;;  %v708_v13 = vld [vmem:[%s952_s1 + $0x58] sm:$0xff]   ;;  %v711_v16 = vld [vmem:[%s952_s1 + $0x50] sm:$0xff]  }
   0x5   :  { %615 = vmatprep.subr.bf16.mxu0 %v699_v4  ;;  %v706_v11 = vld [vmem:[%s952_s1 + $0xa0] sm:$0xff]   ;;  %v709_v14 = vld [vmem:[%s952_s1 + $0x98] sm:$0xff]   ;;  %v712_v17 = vld [vmem:[%s952_s1 + $0x90] sm:$0xff]  }
   0x6   :  { %v707_v12 = vld [vmem:[%s952_s1 + $0x20] sm:$0xff]   ;;  %v710_v15 = vld [vmem:[%s952_s1 + $0x18] sm:$0xff]   ;;  %v713_v18 = vld [vmem:[%s952_s1 + $0x10] sm:$0xff]  }
   0x7   :  { %296 = vmatpush1.bf16.msra.mxu1 %v700_v5  ;;  %v714_v19 = vld [vmem:[%s952_s1 + $0x48] sm:$0xff]   ;;  %v27_v22 = vld [vmem:[%s953_s0] sm:$0xff]  ;;  %v725_v31 = vld [vmem:[%s954_s3 + $0x38] sm:$0xff]  }
   0x8   :  { %616 = vmatpush3.bf16.msra.mxu0 %v701_v6  ;;  %297 = vmatprep.subr.bf16.mxu1 %v741_v0  ;;  %v715_v20 = vld [vmem:[%s952_s1 + $0x88] sm:$0xff]   ;;  %v717_v23 = vld [vmem:[%s952_s1 + $0x40] sm:$0xff]   ;;  %v566_v24 = vcombine.high %v27_v22, %v27_v22  ;;  %v565_v30 = vcombine.low %v27_v22, %v27_v22  ;;  %v726_v34 = vld [vmem:[%s954_s3 + $0x30] sm:$0xff]  }
   0x9   :  { %617 = vmatprep.subr.bf16.mxu0 %v702_v7  ;;  %v716_v21 = vld [vmem:[%s952_s1 + $0x8] sm:$0xff]   ;;  %v718_v27 = vld [vmem:[%s952_s1 + $0x80] sm:$0xff]   ;;  %v729_v37 = vld [vmem:[%s954_s3 + $0x18] sm:$0xff]  }
   0xa   :  { %v28_v25 = vld [vmem:[%s953_s0 + $0x8] sm:$0xff]  ;;  %285 = vmatprep.mubr.bf16.mxu0 %v566_v24  ;;  %v719_v28 = vld [vmem:[%s952_s1] sm:$0xff]   ;;  %v730_v38 = vld [vmem:[%s954_s3 + $0x10] sm:$0xff]  }
   0xb   :  { %298 = vmatpush1.bf16.msra.mxu1 %v703_v8  ;;  %v568_v26 = vcombine.high %v28_v25, %v28_v25  ;;  %v722_v29 = vld [vmem:[%s952_s1 + $0xc0] sm:$0xff]   ;;  %v567_v33 = vcombine.low %v28_v25, %v28_v25  ;;  %v727_v35 = vld [vmem:[%s954_s3 + $0x28] sm:$0xff]   ;;  %v733_v41 = vld [vmem:[%s955_s5 + $0x38] sm:$0xff]  }
   0xc   :  { %618 = vmatpush3.bf16.msra.mxu0 %v704_v9  ;;  %299 = vmatprep.subr.bf16.mxu1 %v741_v0  ;;  %v728_v36 = vld [vmem:[%s954_s3 + $0x20] sm:$0xff]   ;;  %v731_v39 = vld [vmem:[%s954_s3 + $0x8] sm:$0xff]   ;;  %v734_v42 = vld [vmem:[%s955_s5 + $0x30] sm:$0xff]  }
   0xd   :  { %619 = vmatprep.subr.bf16.mxu0 %v705_v10  ;;  %594 = vmatprep.mubr.msk.bf16.mxu1 %vm249_vm0, %v568_v26  ;;  %v732_v40 = vld [vmem:[%s954_s3] sm:$0xff]   ;;  %v735_v43 = vld [vmem:[%s955_s5 + $0x28] sm:$0xff]   ;;  %v737_v45 = vld [vmem:[%s955_s5 + $0x18] sm:$0xff]  }
   0xe   :  { %v736_v44 = vld [vmem:[%s955_s5 + $0x20] sm:$0xff]   ;;  %v738_v46 = vld [vmem:[%s955_s5 + $0x10] sm:$0xff]   ;;  %v739_v61 = vld [vmem:[%s955_s5 + $0x8] sm:$0xff]  }
   0xf   :  { %300 = vmatpush1.bf16.msra.mxu1 %v706_v11  ;;  %v564_v49 = vld [vmem:[%s956_s2] ss:$0 sm:$0xff] }
  0x10   :  { %620 = vmatpush3.bf16.msra.mxu0 %v707_v12  ;;  %301 = vmatprep.subr.bf16.mxu1 %v741_v0  ;;  %v740_v62 = vld [vmem:[%s955_s5] sm:$0xff]  }
  0x11   :  { %621 = vmatprep.subr.bf16.mxu0 %v708_v13  ;;  %v595_v63 = vld [vmem:[%s957_s4] ss:$0 sm:$0xff] }
  0x12   :  { %v604_v7 = vld [vmem:[%s958_s6] ss:$0 sm:$0xff] }
  0x13   :  { %302 = vmatpush1.bf16.msra.mxu1 %v709_v14 }
  0x14   :  { %622 = vmatpush3.bf16.msra.mxu0 %v710_v15  ;;  %303 = vmatprep.subr.bf16.mxu1 %v741_v0 }
  0x15   :  { %623 = vmatprep.subr.bf16.mxu0 %v711_v16 }
  0x17   :  { %304 = vmatpush1.bf16.msra.mxu1 %v712_v17 }
  0x18   :  { %624 = vmatpush3.bf16.msra.mxu0 %v713_v18  ;;  %305 = vmatprep.subr.bf16.mxu1 %v741_v0 }
  0x19   :  { %625 = vmatprep.subr.bf16.mxu0 %v714_v19 }
  0x1b   :  { %306 = vmatpush1.bf16.msra.mxu1 %v715_v20 }
  0x1c   :  { %626 = vmatpush3.bf16.msra.mxu0 %v716_v21  ;;  %307 = vmatprep.subr.bf16.mxu1 %v741_v0 }
  0x1d   :  { %627 = vmatprep.subr.bf16.mxu0 %v717_v23 }
  0x1f   :  { %308 = vmatpush1.bf16.msra.mxu1 %v718_v27 }
  0x20   :  { %628 = vmatpush3.bf16.msra.mxu0 %v719_v28  ;;  %323 = vmatprep.subr.bf16.mxu1 %v741_v0 }
  0x21   :  { %653 = vmatprep.subr.bf16.mxu0 %v742_v32 }
  0x23   :  { %286 = vmatmul.mubr.bf16.vlgmr.msra.gmra.mxu0 %v565_v30  ;;  %324 = vmatpush2.bf16.msra.mxu1 %v722_v29 }
  0x24   :  { %654 = vmatpush3.bf16.msra.mxu0 %v725_v31  ;;  %673 = vmatprep.subr.bf16.mxu1 %v742_v32 }
  0x25   :  { %655 = vmatprep.subr.bf16.mxu0 %v742_v32  ;;  %669 = vmatprep.mubr.msk.bf16.mxu0 %vm743_vm1, %v742_v32 }
  0x26   :  { %326 = vmatmul.mubr.bf16.vlgmr.msra.gmra.mxu1 %v567_v33 }
  0x27   :  { %689 = vmatprep.mubr.msk.bf16.mxu1 %vm743_vm1, %v742_v32  ;;  %674 = vmatpush3.bf16.msra.mxu1 %v733_v41 }
  0x28   :  { %656 = vmatpush3.bf16.msra.mxu0 %v726_v34  ;;  %675 = vmatprep.subr.bf16.mxu1 %v742_v32 }
  0x29   :  { %657 = vmatprep.subr.bf16.mxu0 %v742_v32 }
  0x2b   :  { %676 = vmatpush3.bf16.msra.mxu1 %v734_v42 }
  0x2c   :  { %658 = vmatpush3.bf16.msra.mxu0 %v727_v35  ;;  %677 = vmatprep.subr.bf16.mxu1 %v742_v32 }
  0x2d   :  { %659 = vmatprep.subr.bf16.mxu0 %v742_v32 }
  0x2f   :  { %678 = vmatpush3.bf16.msra.mxu1 %v735_v43 }
  0x30   :  { %660 = vmatpush3.bf16.msra.mxu0 %v728_v36  ;;  %679 = vmatprep.subr.bf16.mxu1 %v742_v32 }
  0x31   :  { %661 = vmatprep.subr.bf16.mxu0 %v742_v32 }
  0x33   :  { %680 = vmatpush3.bf16.msra.mxu1 %v736_v44 }
  0x34   :  { %662 = vmatpush3.bf16.msra.mxu0 %v729_v37  ;;  %681 = vmatprep.subr.bf16.mxu1 %v742_v32 }
  0x35   :  { %663 = vmatprep.subr.bf16.mxu0 %v742_v32 }
  0x37   :  { %682 = vmatpush3.bf16.msra.mxu1 %v737_v45 }
  0x38   :  { %664 = vmatpush3.bf16.msra.mxu0 %v730_v38  ;;  %683 = vmatprep.subr.bf16.mxu1 %v742_v32 }
  0x39   :  { %665 = vmatprep.subr.bf16.mxu0 %v742_v32 }
  0x3b   :  { %684 = vmatpush3.bf16.msra.mxu1 %v738_v46 }
  0x3c   :  { %666 = vmatpush3.bf16.msra.mxu0 %v731_v39  ;;  %685 = vmatprep.subr.bf16.mxu1 %v742_v32 }
  0x3d   :  { %667 = vmatprep.subr.bf16.mxu0 %v742_v32 }
  0x3f   :  { %686 = vmatpush3.bf16.msra.mxu1 %v739_v61 }
  0x40   :  { %668 = vmatpush3.bf16.msra.mxu0 %v732_v40  ;;  %687 = vmatprep.subr.bf16.mxu1 %v742_v32 }
  0x43   :  { %688 = vmatpush3.bf16.msra.mxu1 %v740_v62 }
  0xe3   :  { %v629_v47 = vpop.f32.mrf.mxu0 }
  0xe5   :  { %v630_v48 = vpop.f32.mrf.mxu0 }
  0xe6   :  { %v631_v50 = vadd.f32 %v630_v48, %v629_v47  ;;  %v327_v51 = vpop.f32.mrf.mxu1 }
  0xe7   :  { %v632_v52 = vpop.f32.mrf.mxu0 }
  0xe8   :  { %v288_v53 = vadd.f32 %v631_v50, %v564_v49  ;;  %v329_v54 = vpop.f32.mrf.mxu1 }
  0xe9   :  { %v633_v55 = vpop.f32.mrf.mxu0 }
  0xea   :  { %v328_v56 = vadd.f32 %v327_v51, %v288_v53  ;;  %v330_v57 = vpop.f32.mrf.mxu1 }
  0xec   :  { %v333_v58 = vmax.f32 %v328_v56, 0.0  ;;  %v331_v59 = vpop.f32.mrf.mxu1 }
  0xee   :  { %v334_v60 = vpack.c.bf16 %v333_v58, %v333_v58 }
  0xf0   :  { %670 = vmatmul.mubr.bf16.vlgmr.msra.gmra.mxu0 %v334_v60 }
 0x1b0   :  { %v440_v0 = vpop.f32.mrf.mxu0 }
 0x1b1   :  { %v441_v1 = vadd.f32 %v595_v63, %v440_v0 }
 0x1b2   :  { %v671_v2 = vpop.f32.mrf.mxu0 }
 0x1b3   :  { %v446_v3 = vmax.f32 %v441_v1, 0.0 }
 0x1b4   :  { %v443_v4 = vpop.f32.mrf.mxu0 }
 0x1b5   :  { %v447_v5 = vpack.c.bf16 %v446_v3, %v446_v3 }
 0x1b6   :  { %v672_v6 = vpop.f32.mrf.mxu0 }
 0x1b7   :  { %690 = vmatmul.mubr.bf16.vlgmr.msra.gmra.mxu1 %v447_v5 }
 0x277   :  { %v553_v8 = vpop.f32.mrf.mxu1 }
 0x278   :  { %v554_v9 = vadd.f32 %v604_v7, %v553_v8 }
 0x279   :  { %v691_v10 = vpop.f32.mrf.mxu1 }
 0x27a   :  { %559 = vst [vmem:[%s959_s7] sm:$0xff] %v554_v9 }
 0x27b   :  { %v556_v11 = vpop.f32.mrf.mxu1 }
 0x27d   :  { %v692_v12 = vpop.f32.mrf.mxu1 }

</bundles_post_ra>
